<compile_context>
chip_gen: v7x
topology: tpu7x:2x2x1
jax: 0.10.0
libtpu: 0.0.40
codegen_flags: <defaults>
</compile_context>

<pallas_src>
import functools

import jax
import jax.numpy as jnp
import numpy as np
from jax.experimental import pallas as pl
from jax.experimental.pallas import tpu as pltpu


# ----------------------------------------------------------------------------
# Fused Pallas kernel: all TemporalBlocks + Linear + Sigmoid head
# ----------------------------------------------------------------------------
def fused_tcn_kernel(*refs, N, L, k, block_meta, max_shift):
    """refs = (x, <block params...>, head_w, head_b, out, pad_scratch).

    Per block the params are (w1, b1, w2, b2) and, iff c_in != c_out,
    additionally (wd, bd):
        w1: (k*c_in,  c_out) bf16   im2col weight, tap j in rows [j*c_in:(j+1)*c_in]
        w2: (k*c_out, c_out) bf16
        b*: (1, c_out) f32
        wd: (c_in, c_out) bf16      bd: (1, c_out) f32
    x  : (N, L, c_in0) f32, channels-last
    out: (N, output_size) f32
    pad_scratch: (N, L + max_shift, c_max) f32 zero-padded causal staging buffer.
    block_meta: tuple of (c_in, c_out, dilation, has_downsample), static.
    """
    x_ref = refs[0]
    pad_ref = refs[-1]
    o_ref = refs[-2]
    head_b_ref = refs[-3]
    head_w_ref = refs[-4]
    params = refs[1:-4]

    # Zero once: the first `max_shift` rows are the causal zero-padding and are
    # never written afterwards (handles shifts >= L correctly as well).
    pad_ref[...] = jnp.zeros(pad_ref.shape, jnp.float32)

    c0 = block_meta[0][0]
    y = x_ref[...].reshape(N * L, c0)            # activations, flat (N*L, C), f32

    idx = 0
    for (c_in, c_out, d, has_ds) in block_meta:
        w1_ref, b1_ref, w2_ref, b2_ref = params[idx:idx + 4]
        idx += 4
        if has_ds:
            wd_ref, bd_ref = params[idx:idx + 2]
            idx += 2

        def dilated_causal_conv(a, c, w_ref, b_ref, d=d):
            # Stage activation into the zero-padded scratch; each tap is then a
            # static-offset window; concat taps along channels -> one MXU matmul.
            pad_ref[:, max_shift:max_shift + L, :c] = a.reshape(N, L, c)
            taps = []
            for j in range(k):                    # tap j looks back (k-1-j)*d steps
                start = max_shift - (k - 1 - j) * d
                taps.append(pad_ref[:, start:start + L, :c])
            col = jnp.concatenate(taps, axis=2).reshape(N * L, k * c)
            acc = jnp.dot(col.astype(jnp.bfloat16), w_ref[...],
                          preferred_element_type=jnp.float32)
            return acc + b_ref[...]

        h = jnp.maximum(dilated_causal_conv(y, c_in, w1_ref, b1_ref), 0.0)
        # TODO(synk): nn.Dropout is identity at inference; training-mode RNG
        #             masking is intentionally not implemented.
        h = jnp.maximum(dilated_causal_conv(h, c_out, w2_ref, b2_ref), 0.0)

        if has_ds:
            res = jnp.dot(y.astype(jnp.bfloat16), wd_ref[...],
                          preferred_element_type=jnp.float32) + bd_ref[...]
        else:
            res = y                               # identity residual: no matmul
        y = jnp.maximum(h + res, 0.0)

    # Head: Linear + Sigmoid on the last timestep of each sample (kept f32).
    c_last = block_meta[-1][1]
    last = y.reshape(N, L, c_last)[:, L - 1, :]                 # (N, c_last)
    z = jnp.dot(last, head_w_ref[...],
                preferred_element_type=jnp.float32) + head_b_ref[...]
    o_ref[...] = jax.nn.sigmoid(z)


# ----------------------------------------------------------------------------
# Parameter preparation (hoisted out of the forward) + pallas_call wrapper
# ----------------------------------------------------------------------------
def fold_weight_norm(v, g):
    # v: (C_out, C_in, K), g: (C_out,)  -- PyTorch weight_norm dim=0
    norm = jnp.sqrt(jnp.sum(v * v, axis=(1, 2), keepdims=True))
    return (g[:, None, None] * v) / norm


def build_forward(block_params, lin_w, lin_b, *, kernel_size, input_size,
                  output_size, N, L):
    """Reshape / fold / cast all parameters once; return a jitted forward fn."""
    k = kernel_size
    flat_params = []
    block_meta = []
    c_in = input_size
    for i, p in enumerate(block_params):
        d = 2 ** i
        c_out = p["w1"].shape[0]
        # torch layout (C_out, C_in, K) -> im2col layout (K*C_in, C_out); bf16 MXU inputs.
        w1 = jnp.transpose(p["w1"], (2, 1, 0)).reshape(k * c_in, c_out)
        w2 = jnp.transpose(p["w2"], (2, 1, 0)).reshape(k * c_out, c_out)
        flat_params += [w1.astype(jnp.bfloat16),
                        p["b1"].reshape(1, c_out).astype(jnp.float32),
                        w2.astype(jnp.bfloat16),
                        p["b2"].reshape(1, c_out).astype(jnp.float32)]
        has_ds = p["wd"] is not None
        if has_ds:
            flat_params += [jnp.transpose(p["wd"]).astype(jnp.bfloat16),   # (C_in, C_out)
                            p["bd"].reshape(1, c_out).astype(jnp.float32)]
        block_meta.append((c_in, c_out, d, has_ds))
        c_in = c_out
    flat_params += [jnp.transpose(lin_w).astype(jnp.float32),              # (C_last, O)
                    lin_b.reshape(1, output_size).astype(jnp.float32)]

    c_max = max([input_size] + [m[1] for m in block_meta])
    max_shift = max((k - 1) * m[2] for m in block_meta)

    kernel = functools.partial(fused_tcn_kernel, N=N, L=L, k=k,
                               block_meta=tuple(block_meta), max_shift=max_shift)
    vmem = pl.BlockSpec(memory_space=pltpu.MemorySpace.VMEM)
    call = pl.pallas_call(
        kernel,
        out_shape=jax.ShapeDtypeStruct((N, output_size), jnp.float32),
        in_specs=[vmem] * (1 + len(flat_params)),
        out_specs=vmem,
        scratch_shapes=[pltpu.VMEM((N, L + max_shift, c_max), jnp.float32)],
    )

    @jax.jit
    def forward(x_ncl):
        x_nlc = jnp.transpose(x_ncl, (0, 2, 1)).astype(jnp.float32)   # NCL -> NLC
        return call(x_nlc, *flat_params)

    return forward


# ----------------------------------------------------------------------------
# Deterministic synthetic parameters
# ----------------------------------------------------------------------------
def make_block_params(key, c_in, c_out, k):
    ks = jax.random.split(key, 8)
    v1 = 0.1 * jax.random.normal(ks[0], (c_out, c_in, k), jnp.float32)
    g1 = 0.5 + jnp.abs(jax.random.normal(ks[1], (c_out,), jnp.float32))
    b1 = 0.1 * jax.random.normal(ks[2], (c_out,), jnp.float32)
    v2 = 0.1 * jax.random.normal(ks[3], (c_out, c_out, k), jnp.float32)
    g2 = 0.5 + jnp.abs(jax.random.normal(ks[4], (c_out,), jnp.float32))
    b2 = 0.1 * jax.random.normal(ks[5], (c_out,), jnp.float32)
    if c_in != c_out:
        wd = 0.1 * jax.random.normal(ks[6], (c_out, c_in), jnp.float32)
        bd = 0.1 * jax.random.normal(ks[7], (c_out,), jnp.float32)
    else:
        wd = None           # PyTorch: downsample is None -> identity residual
        bd = None
    return {"w1": fold_weight_norm(v1, g1), "b1": b1,     # torch layout (O, I, K)
            "w2": fold_weight_norm(v2, g2), "b2": b2,
            "wd": wd, "bd": bd}


# ----------------------------------------------------------------------------
# Pure-JAX reference (f32) matching the PyTorch module
# ----------------------------------------------------------------------------
def _conv1d_ref(x_ncl, w_oik, b, d, pad):
    out = jax.lax.conv_general_dilated(
        x_ncl, w_oik, window_strides=(1,), padding=[(pad, pad)],
        rhs_dilation=(d,), dimension_numbers=("NCH", "OIH", "NCH"))
    out = out[:, :, : out.shape[2] - pad]             # Chomp1d
    return out + b[None, :, None]


def model_reference(x_ncl, block_params, lin_w, lin_b, kernel_size):
    y = x_ncl
    for i, p in enumerate(block_params):
        d = 2 ** i
        pad = (kernel_size - 1) * d
        h = jnp.maximum(_conv1d_ref(y, p["w1"], p["b1"], d, pad), 0.0)
        h = jnp.maximum(_conv1d_ref(h, p["w2"], p["b2"], d, pad), 0.0)
        if p["wd"] is None:
            res = y
        else:
            res = jnp.einsum("oi,nil->nol", p["wd"], y) + p["bd"][None, :, None]
        y = jnp.maximum(h + res, 0.0)
    last = y[:, :, -1]
    return jax.nn.sigmoid(last @ lin_w.T + lin_b)


# ----------------------------------------------------------------------------
if __name__ == "__main__":
    # Model(input_size, output_size, num_channels, kernel_size, dropout)
    N, L = 2, 16
    input_size = 4
    output_size = 3
    num_channels = (8, 8, 16)   # middle block exercises the identity-residual path
    kernel_size = 2
    # dropout = 0.2  # identity at inference

    key = jax.random.PRNGKey(0)
    k_x, k_lw, k_lb, *k_blocks = jax.random.split(key, 3 + len(num_channels))

    x = jax.random.normal(k_x, (N, input_size, L), jnp.float32)   # (N, C_in, L)

    block_params = []
    c_prev = input_size
    for i, c_out in enumerate(num_channels):
        block_params.append(make_block_params(k_blocks[i], c_prev, c_out,
                                              kernel_size))
        c_prev = c_out

    lin_w = 0.1 * jax.random.normal(k_lw, (output_size, num_channels[-1]),
                                    jnp.float32)
    lin_b = 0.1 * jax.random.normal(k_lb, (output_size,), jnp.float32)

    forward = build_forward(block_params, lin_w, lin_b,
                            kernel_size=kernel_size, input_size=input_size,
                            output_size=output_size, N=N, L=L)

    out = jax.block_until_ready(forward(x))
    ref = jax.block_until_ready(
        model_reference(x, block_params, lin_w, lin_b, kernel_size))

    # Tolerance accounts for bf16 MXU inputs (f32 accumulation) vs. the f32 reference.
    np.testing.assert_allclose(np.asarray(out), np.asarray(ref),
                               rtol=3e-2, atol=5e-3)
    assert out.shape == (N, output_size)
    print("KERNEL_OK")
</pallas_src>

<mosaic_0001>
module attributes {stable_mosaic.version = 11 : i64} {
  func.func @fused_tcn_kernel(%arg0: memref<2x16x4xf32, #tpu.memory_space<vmem>>, %arg1: memref<8x8xbf16, #tpu.memory_space<vmem>>, %arg2: memref<1x8xf32, #tpu.memory_space<vmem>>, %arg3: memref<16x8xbf16, #tpu.memory_space<vmem>>, %arg4: memref<1x8xf32, #tpu.memory_space<vmem>>, %arg5: memref<4x8xbf16, #tpu.memory_space<vmem>>, %arg6: memref<1x8xf32, #tpu.memory_space<vmem>>, %arg7: memref<16x8xbf16, #tpu.memory_space<vmem>>, %arg8: memref<1x8xf32, #tpu.memory_space<vmem>>, %arg9: memref<16x8xbf16, #tpu.memory_space<vmem>>, %arg10: memref<1x8xf32, #tpu.memory_space<vmem>>, %arg11: memref<16x16xbf16, #tpu.memory_space<vmem>>, %arg12: memref<1x16xf32, #tpu.memory_space<vmem>>, %arg13: memref<32x16xbf16, #tpu.memory_space<vmem>>, %arg14: memref<1x16xf32, #tpu.memory_space<vmem>>, %arg15: memref<8x16xbf16, #tpu.memory_space<vmem>>, %arg16: memref<1x16xf32, #tpu.memory_space<vmem>>, %arg17: memref<16x3xf32, #tpu.memory_space<vmem>>, %arg18: memref<1x3xf32, #tpu.memory_space<vmem>>, %arg19: memref<2x3xf32, #tpu.memory_space<vmem>>, %arg20: memref<2x20x16xf32, #tpu.memory_space<vmem>>) attributes {dimension_semantics = [], scalar_prefetch = 0 : i64, scratch_operands = 1 : i64, tpu.core_type = #tpu.core_type<tc>} {
    %cst = arith.constant 0.000000e+00 : f32
    %0 = vector.broadcast %cst : f32 to vector<2x20x16xf32>
    %c0 = arith.constant 0 : index
    %c0_0 = arith.constant 0 : index
    %c0_1 = arith.constant 0 : index
    %1 = vector.load %arg20[%c0, %c0_0, %c0_1] : memref<2x20x16xf32, #tpu.memory_space<vmem>>, vector<2x20x16xf32>
    tpu.vector_store %arg20[%c0, %c0_0, %c0_1], %0 {strides = array<i32>} : memref<2x20x16xf32, #tpu.memory_space<vmem>>, vector<2x20x16xf32>,
    %c0_2 = arith.constant 0 : index
    %c0_3 = arith.constant 0 : index
    %c0_4 = arith.constant 0 : index
    %2 = vector.load %arg0[%c0_2, %c0_3, %c0_4] : memref<2x16x4xf32, #tpu.memory_space<vmem>>, vector<2x16x4xf32>
    %3 = vector.shape_cast %2 : vector<2x16x4xf32> to vector<32x4xf32>
    %4 = vector.shape_cast %3 : vector<32x4xf32> to vector<2x16x4xf32>
    %c0_5 = arith.constant 0 : index
    %c4 = arith.constant 4 : index
    %c0_6 = arith.constant 0 : index
    %5 = vector.load %arg20[%c0_5, %c4, %c0_6] : memref<2x20x16xf32, #tpu.memory_space<vmem>>, vector<2x16x4xf32>
    tpu.vector_store %arg20[%c0_5, %c4, %c0_6], %4 {strides = array<i32>} : memref<2x20x16xf32, #tpu.memory_space<vmem>>, vector<2x16x4xf32>,
    %c0_7 = arith.constant 0 : index
    %c3 = arith.constant 3 : index
    %c0_8 = arith.constant 0 : index
    %6 = vector.load %arg20[%c0_7, %c3, %c0_8] : memref<2x20x16xf32, #tpu.memory_space<vmem>>, vector<2x16x4xf32>
    %c0_9 = arith.constant 0 : index
    %c4_10 = arith.constant 4 : index
    %c0_11 = arith.constant 0 : index
    %7 = vector.load %arg20[%c0_9, %c4_10, %c0_11] : memref<2x20x16xf32, #tpu.memory_space<vmem>>, vector<2x16x4xf32>
    %8 = tpu.concatenate %6, %7 in 2 : vector<2x16x4xf32>, vector<2x16x4xf32> -> vector<2x16x8xf32>
    %9 = vector.shape_cast %8 : vector<2x16x8xf32> to vector<32x8xf32>
    %10 = arith.truncf %9 : vector<32x8xf32> to vector<32x8xbf16>
    %c0_12 = arith.constant 0 : index
    %c0_13 = arith.constant 0 : index
    %11 = vector.load %arg1[%c0_12, %c0_13] : memref<8x8xbf16, #tpu.memory_space<vmem>>, vector<8x8xbf16>
    %cst_14 = arith.constant dense<0.000000e+00> : vector<32x8xf32>
    %12 = tpu.matmul %10, %11, %cst_14 {dimension_numbers = #tpu.dot_dimension_numbers<[1], [0], [0], [1], [0, 0, 1, 1], [], []>} : vector<32x8xbf16>, vector<8x8xbf16>, vector<32x8xf32> -> vector<32x8xf32>
    %c0_15 = arith.constant 0 : index
    %c0_16 = arith.constant 0 : index
    %13 = vector.load %arg2[%c0_15, %c0_16] : memref<1x8xf32, #tpu.memory_space<vmem>>, vector<1x8xf32>
    %14 = vector.broadcast %13 : vector<1x8xf32> to vector<32x8xf32>
    %15 = arith.addf %12, %14 : vector<32x8xf32>
    %cst_17 = arith.constant 0.000000e+00 : f32
    %16 = vector.broadcast %cst_17 : f32 to vector<32x8xf32>
    %17 = arith.maximumf %15, %16 : vector<32x8xf32>
    %18 = vector.shape_cast %17 : vector<32x8xf32> to vector<2x16x8xf32>
    %c0_18 = arith.constant 0 : index
    %c4_19 = arith.constant 4 : index
    %c0_20 = arith.constant 0 : index
    %19 = vector.load %arg20[%c0_18, %c4_19, %c0_20] : memref<2x20x16xf32, #tpu.memory_space<vmem>>, vector<2x16x8xf32>
    tpu.vector_store %arg20[%c0_18, %c4_19, %c0_20], %18 {strides = array<i32>} : memref<2x20x16xf32, #tpu.memory_space<vmem>>, vector<2x16x8xf32>,
    %c0_21 = arith.constant 0 : index
    %c3_22 = arith.constant 3 : index
    %c0_23 = arith.constant 0 : index
    %20 = vector.load %arg20[%c0_21, %c3_22, %c0_23] : memref<2x20x16xf32, #tpu.memory_space<vmem>>, vector<2x16x8xf32>
    %c0_24 = arith.constant 0 : index
    %c4_25 = arith.constant 4 : index
    %c0_26 = arith.constant 0 : index
    %21 = vector.load %arg20[%c0_24, %c4_25, %c0_26] : memref<2x20x16xf32, #tpu.memory_space<vmem>>, vector<2x16x8xf32>
    %22 = tpu.concatenate %20, %21 in 2 : vector<2x16x8xf32>, vector<2x16x8xf32> -> vector<2x16x16xf32>
    %23 = vector.shape_cast %22 : vector<2x16x16xf32> to vector<32x16xf32>
    %24 = arith.truncf %23 : vector<32x16xf32> to vector<32x16xbf16>
    %c0_27 = arith.constant 0 : index
    %c0_28 = arith.constant 0 : index
    %25 = vector.load %arg3[%c0_27, %c0_28] : memref<16x8xbf16, #tpu.memory_space<vmem>>, vector<16x8xbf16>
    %cst_29 = arith.constant dense<0.000000e+00> : vector<32x8xf32>
    %26 = tpu.matmul %24, %25, %cst_29 {dimension_numbers = #tpu.dot_dimension_numbers<[1], [0], [0], [1], [0, 0, 1, 1], [], []>} : vector<32x16xbf16>, vector<16x8xbf16>, vector<32x8xf32> -> vector<32x8xf32>
    %c0_30 = arith.constant 0 : index
    %c0_31 = arith.constant 0 : index
    %27 = vector.load %arg4[%c0_30, %c0_31] : memref<1x8xf32, #tpu.memory_space<vmem>>, vector<1x8xf32>
    %28 = vector.broadcast %27 : vector<1x8xf32> to vector<32x8xf32>
    %29 = arith.addf %26, %28 : vector<32x8xf32>
    %cst_32 = arith.constant 0.000000e+00 : f32
    %30 = vector.broadcast %cst_32 : f32 to vector<32x8xf32>
    %31 = arith.maximumf %29, %30 : vector<32x8xf32>
    %32 = arith.truncf %3 : vector<32x4xf32> to vector<32x4xbf16>
    %c0_33 = arith.constant 0 : index
    %c0_34 = arith.constant 0 : index
    %33 = vector.load %arg5[%c0_33, %c0_34] : memref<4x8xbf16, #tpu.memory_space<vmem>>, vector<4x8xbf16>
    %cst_35 = arith.constant dense<0.000000e+00> : vector<32x8xf32>
    %34 = tpu.matmul %32, %33, %cst_35 {dimension_numbers = #tpu.dot_dimension_numbers<[1], [0], [0], [1], [0, 0, 1, 1], [], []>} : vector<32x4xbf16>, vector<4x8xbf16>, vector<32x8xf32> -> vector<32x8xf32>
    %c0_36 = arith.constant 0 : index
    %c0_37 = arith.constant 0 : index
    %35 = vector.load %arg6[%c0_36, %c0_37] : memref<1x8xf32, #tpu.memory_space<vmem>>, vector<1x8xf32>
    %36 = vector.broadcast %35 : vector<1x8xf32> to vector<32x8xf32>
    %37 = arith.addf %34, %36 : vector<32x8xf32>
    %38 = arith.addf %31, %37 : vector<32x8xf32>
    %cst_38 = arith.constant 0.000000e+00 : f32
    %39 = vector.broadcast %cst_38 : f32 to vector<32x8xf32>
    %40 = arith.maximumf %38, %39 : vector<32x8xf32>
    %41 = vector.shape_cast %40 : vector<32x8xf32> to vector<2x16x8xf32>
    %c0_39 = arith.constant 0 : index
    %c4_40 = arith.constant 4 : index
    %c0_41 = arith.constant 0 : index
    %42 = vector.load %arg20[%c0_39, %c4_40, %c0_41] : memref<2x20x16xf32, #tpu.memory_space<vmem>>, vector<2x16x8xf32>
    tpu.vector_store %arg20[%c0_39, %c4_40, %c0_41], %41 {strides = array<i32>} : memref<2x20x16xf32, #tpu.memory_space<vmem>>, vector<2x16x8xf32>,
    %c0_42 = arith.constant 0 : index
    %c2 = arith.constant 2 : index
    %c0_43 = arith.constant 0 : index
    %43 = vector.load %arg20[%c0_42, %c2, %c0_43] : memref<2x20x16xf32, #tpu.memory_space<vmem>>, vector<2x16x8xf32>
    %c0_44 = arith.constant 0 : index
    %c4_45 = arith.constant 4 : index
    %c0_46 = arith.constant 0 : index
    %44 = vector.load %arg20[%c0_44, %c4_45, %c0_46] : memref<2x20x16xf32, #tpu.memory_space<vmem>>, vector<2x16x8xf32>
    %45 = tpu.concatenate %43, %44 in 2 : vector<2x16x8xf32>, vector<2x16x8xf32> -> vector<2x16x16xf32>
    %46 = vector.shape_cast %45 : vector<2x16x16xf32> to vector<32x16xf32>
    %47 = arith.truncf %46 : vector<32x16xf32> to vector<32x16xbf16>
    %c0_47 = arith.constant 0 : index
    %c0_48 = arith.constant 0 : index
    %48 = vector.load %arg7[%c0_47, %c0_48] : memref<16x8xbf16, #tpu.memory_space<vmem>>, vector<16x8xbf16>
    %cst_49 = arith.constant dense<0.000000e+00> : vector<32x8xf32>
    %49 = tpu.matmul %47, %48, %cst_49 {dimension_numbers = #tpu.dot_dimension_numbers<[1], [0], [0], [1], [0, 0, 1, 1], [], []>} : vector<32x16xbf16>, vector<16x8xbf16>, vector<32x8xf32> -> vector<32x8xf32>
    %c0_50 = arith.constant 0 : index
    %c0_51 = arith.constant 0 : index
    %50 = vector.load %arg8[%c0_50, %c0_51] : memref<1x8xf32, #tpu.memory_space<vmem>>, vector<1x8xf32>
    %51 = vector.broadcast %50 : vector<1x8xf32> to vector<32x8xf32>
    %52 = arith.addf %49, %51 : vector<32x8xf32>
    %cst_52 = arith.constant 0.000000e+00 : f32
    %53 = vector.broadcast %cst_52 : f32 to vector<32x8xf32>
    %54 = arith.maximumf %52, %53 : vector<32x8xf32>
    %55 = vector.shape_cast %54 : vector<32x8xf32> to vector<2x16x8xf32>
    %c0_53 = arith.constant 0 : index
    %c4_54 = arith.constant 4 : index
    %c0_55 = arith.constant 0 : index
    %56 = vector.load %arg20[%c0_53, %c4_54, %c0_55] : memref<2x20x16xf32, #tpu.memory_space<vmem>>, vector<2x16x8xf32>
    tpu.vector_store %arg20[%c0_53, %c4_54, %c0_55], %55 {strides = array<i32>} : memref<2x20x16xf32, #tpu.memory_space<vmem>>, vector<2x16x8xf32>,
    %c0_56 = arith.constant 0 : index
    %c2_57 = arith.constant 2 : index
    %c0_58 = arith.constant 0 : index
    %57 = vector.load %arg20[%c0_56, %c2_57, %c0_58] : memref<2x20x16xf32, #tpu.memory_space<vmem>>, vector<2x16x8xf32>
    %c0_59 = arith.constant 0 : index
    %c4_60 = arith.constant 4 : index
    %c0_61 = arith.constant 0 : index
    %58 = vector.load %arg20[%c0_59, %c4_60, %c0_61] : memref<2x20x16xf32, #tpu.memory_space<vmem>>, vector<2x16x8xf32>
    %59 = tpu.concatenate %57, %58 in 2 : vector<2x16x8xf32>, vector<2x16x8xf32> -> vector<2x16x16xf32>
    %60 = vector.shape_cast %59 : vector<2x16x16xf32> to vector<32x16xf32>
    %61 = arith.truncf %60 : vector<32x16xf32> to vector<32x16xbf16>
    %c0_62 = arith.constant 0 : index
    %c0_63 = arith.constant 0 : index
    %62 = vector.load %arg9[%c0_62, %c0_63] : memref<16x8xbf16, #tpu.memory_space<vmem>>, vector<16x8xbf16>
    %cst_64 = arith.constant dense<0.000000e+00> : vector<32x8xf32>
    %63 = tpu.matmul %61, %62, %cst_64 {dimension_numbers = #tpu.dot_dimension_numbers<[1], [0], [0], [1], [0, 0, 1, 1], [], []>} : vector<32x16xbf16>, vector<16x8xbf16>, vector<32x8xf32> -> vector<32x8xf32>
    %c0_65 = arith.constant 0 : index
    %c0_66 = arith.constant 0 : index
    %64 = vector.load %arg10[%c0_65, %c0_66] : memref<1x8xf32, #tpu.memory_space<vmem>>, vector<1x8xf32>
    %65 = vector.broadcast %64 : vector<1x8xf32> to vector<32x8xf32>
    %66 = arith.addf %63, %65 : vector<32x8xf32>
    %cst_67 = arith.constant 0.000000e+00 : f32
    %67 = vector.broadcast %cst_67 : f32 to vector<32x8xf32>
    %68 = arith.maximumf %66, %67 : vector<32x8xf32>
    %69 = arith.addf %68, %40 : vector<32x8xf32>
    %cst_68 = arith.constant 0.000000e+00 : f32
    %70 = vector.broadcast %cst_68 : f32 to vector<32x8xf32>
    %71 = arith.maximumf %69, %70 : vector<32x8xf32>
    %72 = vector.shape_cast %71 : vector<32x8xf32> to vector<2x16x8xf32>
    %c0_69 = arith.constant 0 : index
    %c4_70 = arith.constant 4 : index
    %c0_71 = arith.constant 0 : index
    %73 = vector.load %arg20[%c0_69, %c4_70, %c0_71] : memref<2x20x16xf32, #tpu.memory_space<vmem>>, vector<2x16x8xf32>
    tpu.vector_store %arg20[%c0_69, %c4_70, %c0_71], %72 {strides = array<i32>} : memref<2x20x16xf32, #tpu.memory_space<vmem>>, vector<2x16x8xf32>,
    %c0_72 = arith.constant 0 : index
    %c0_73 = arith.constant 0 : index
    %c0_74 = arith.constant 0 : index
    %74 = vector.load %arg20[%c0_72, %c0_73, %c0_74] : memref<2x20x16xf32, #tpu.memory_space<vmem>>, vector<2x16x8xf32>
    %c0_75 = arith.constant 0 : index
    %c4_76 = arith.constant 4 : index
    %c0_77 = arith.constant 0 : index
    %75 = vector.load %arg20[%c0_75, %c4_76, %c0_77] : memref<2x20x16xf32, #tpu.memory_space<vmem>>, vector<2x16x8xf32>
    %76 = tpu.concatenate %74, %75 in 2 : vector<2x16x8xf32>, vector<2x16x8xf32> -> vector<2x16x16xf32>
    %77 = vector.shape_cast %76 : vector<2x16x16xf32> to vector<32x16xf32>
    %78 = arith.truncf %77 : vector<32x16xf32> to vector<32x16xbf16>
    %c0_78 = arith.constant 0 : index
    %c0_79 = arith.constant 0 : index
    %79 = vector.load %arg11[%c0_78, %c0_79] : memref<16x16xbf16, #tpu.memory_space<vmem>>, vector<16x16xbf16>
    %cst_80 = arith.constant dense<0.000000e+00> : vector<32x16xf32>
    %80 = tpu.matmul %78, %79, %cst_80 {dimension_numbers = #tpu.dot_dimension_numbers<[1], [0], [0], [1], [0, 0, 1, 1], [], []>} : vector<32x16xbf16>, vector<16x16xbf16>, vector<32x16xf32> -> vector<32x16xf32>
    %c0_81 = arith.constant 0 : index
    %c0_82 = arith.constant 0 : index
    %81 = vector.load %arg12[%c0_81, %c0_82] : memref<1x16xf32, #tpu.memory_space<vmem>>, vector<1x16xf32>
    %82 = vector.broadcast %81 : vector<1x16xf32> to vector<32x16xf32>
    %83 = arith.addf %80, %82 : vector<32x16xf32>
    %cst_83 = arith.constant 0.000000e+00 : f32
    %84 = vector.broadcast %cst_83 : f32 to vector<32x16xf32>
    %85 = arith.maximumf %83, %84 : vector<32x16xf32>
    %86 = vector.shape_cast %85 : vector<32x16xf32> to vector<2x16x16xf32>
    %c0_84 = arith.constant 0 : index
    %c4_85 = arith.constant 4 : index
    %c0_86 = arith.constant 0 : index
    %87 = vector.load %arg20[%c0_84, %c4_85, %c0_86] : memref<2x20x16xf32, #tpu.memory_space<vmem>>, vector<2x16x16xf32>
    tpu.vector_store %arg20[%c0_84, %c4_85, %c0_86], %86 {strides = array<i32>} : memref<2x20x16xf32, #tpu.memory_space<vmem>>, vector<2x16x16xf32>,
    %c0_87 = arith.constant 0 : index
    %c0_88 = arith.constant 0 : index
    %c0_89 = arith.constant 0 : index
    %88 = vector.load %arg20[%c0_87, %c0_88, %c0_89] : memref<2x20x16xf32, #tpu.memory_space<vmem>>, vector<2x16x16xf32>
    %c0_90 = arith.constant 0 : index
    %c4_91 = arith.constant 4 : index
    %c0_92 = arith.constant 0 : index
    %89 = vector.load %arg20[%c0_90, %c4_91, %c0_92] : memref<2x20x16xf32, #tpu.memory_space<vmem>>, vector<2x16x16xf32>
    %90 = tpu.concatenate %88, %89 in 2 : vector<2x16x16xf32>, vector<2x16x16xf32> -> vector<2x16x32xf32>
    %91 = vector.shape_cast %90 : vector<2x16x32xf32> to vector<32x32xf32>
    %92 = arith.truncf %91 : vector<32x32xf32> to vector<32x32xbf16>
    %c0_93 = arith.constant 0 : index
    %c0_94 = arith.constant 0 : index
    %93 = vector.load %arg13[%c0_93, %c0_94] : memref<32x16xbf16, #tpu.memory_space<vmem>>, vector<32x16xbf16>
    %cst_95 = arith.constant dense<0.000000e+00> : vector<32x16xf32>
    %94 = tpu.matmul %92, %93, %cst_95 {dimension_numbers = #tpu.dot_dimension_numbers<[1], [0], [0], [1], [0, 0, 1, 1], [], []>} : vector<32x32xbf16>, vector<32x16xbf16>, vector<32x16xf32> -> vector<32x16xf32>
    %c0_96 = arith.constant 0 : index
    %c0_97 = arith.constant 0 : index
    %95 = vector.load %arg14[%c0_96, %c0_97] : memref<1x16xf32, #tpu.memory_space<vmem>>, vector<1x16xf32>
    %96 = vector.broadcast %95 : vector<1x16xf32> to vector<32x16xf32>
    %97 = arith.addf %94, %96 : vector<32x16xf32>
    %cst_98 = arith.constant 0.000000e+00 : f32
    %98 = vector.broadcast %cst_98 : f32 to vector<32x16xf32>
    %99 = arith.maximumf %97, %98 : vector<32x16xf32>
    %100 = arith.truncf %71 : vector<32x8xf32> to vector<32x8xbf16>
    %c0_99 = arith.constant 0 : index
    %c0_100 = arith.constant 0 : index
    %101 = vector.load %arg15[%c0_99, %c0_100] : memref<8x16xbf16, #tpu.memory_space<vmem>>, vector<8x16xbf16>
    %cst_101 = arith.constant dense<0.000000e+00> : vector<32x16xf32>
    %102 = tpu.matmul %100, %101, %cst_101 {dimension_numbers = #tpu.dot_dimension_numbers<[1], [0], [0], [1], [0, 0, 1, 1], [], []>} : vector<32x8xbf16>, vector<8x16xbf16>, vector<32x16xf32> -> vector<32x16xf32>
    %c0_102 = arith.constant 0 : index
    %c0_103 = arith.constant 0 : index
    %103 = vector.load %arg16[%c0_102, %c0_103] : memref<1x16xf32, #tpu.memory_space<vmem>>, vector<1x16xf32>
    %104 = vector.broadcast %103 : vector<1x16xf32> to vector<32x16xf32>
    %105 = arith.addf %102, %104 : vector<32x16xf32>
    %106 = arith.addf %99, %105 : vector<32x16xf32>
    %cst_104 = arith.constant 0.000000e+00 : f32
    %107 = vector.broadcast %cst_104 : f32 to vector<32x16xf32>
    %108 = arith.maximumf %106, %107 : vector<32x16xf32>
    %109 = vector.shape_cast %108 : vector<32x16xf32> to vector<2x16x16xf32>
    %110 = vector.extract_strided_slice %109 {offsets = [0, 15, 0], sizes = [2, 1, 16], strides = [1, 1, 1]} : vector<2x16x16xf32> to vector<2x1x16xf32>
    %111 = vector.shape_cast %110 : vector<2x1x16xf32> to vector<2x16xf32>
    %c0_105 = arith.constant 0 : index
    %c0_106 = arith.constant 0 : index
    %112 = vector.load %arg17[%c0_105, %c0_106] : memref<16x3xf32, #tpu.memory_space<vmem>>, vector<16x3xf32>
    %cst_107 = arith.constant dense<0.000000e+00> : vector<2x3xf32>
    %113 = tpu.matmul %111, %112, %cst_107 {dimension_numbers = #tpu.dot_dimension_numbers<[1], [0], [0], [1], [0, 0, 1, 1], [], []>} : vector<2x16xf32>, vector<16x3xf32>, vector<2x3xf32> -> vector<2x3xf32>
    %c0_108 = arith.constant 0 : index
    %c0_109 = arith.constant 0 : index
    %114 = vector.load %arg18[%c0_108, %c0_109] : memref<1x3xf32, #tpu.memory_space<vmem>>, vector<1x3xf32>
    %115 = vector.broadcast %114 : vector<1x3xf32> to vector<2x3xf32>
    %116 = arith.addf %113, %115 : vector<2x3xf32>
    %117 = arith.negf %116 : vector<2x3xf32>
    %118 = math.exp %117 : vector<2x3xf32>
    %cst_110 = arith.constant 1.000000e+00 : f32
    %119 = vector.broadcast %cst_110 : f32 to vector<2x3xf32>
    %120 = arith.addf %119, %118 : vector<2x3xf32>
    %121 = arith.divf %119, %120 : vector<2x3xf32>
    %c0_111 = arith.constant 0 : index
    %c0_112 = arith.constant 0 : index
    %122 = vector.load %arg19[%c0_111, %c0_112] : memref<2x3xf32, #tpu.memory_space<vmem>>, vector<2x3xf32>
    tpu.vector_store %arg19[%c0_111, %c0_112], %121 {strides = array<i32>} : memref<2x3xf32, #tpu.memory_space<vmem>>, vector<2x3xf32>,
    return
  }
}

</mosaic_0001>

<bundles_post_ra>
// kernel: forward.1
= control target key start
LH: loop header
LB: loop body
LE: loop exit
PB: predicated region body
PF: predicated region fallthrough
CT: control target
= control target key end

     0   :  { %s1770_s0 = inlined_call_operand.vmem [shape: f32[2,16,4], index: 0, kind: input, shape index: {}]   ;;  %s1771_s1 = inlined_call_operand.hbm [shape: bf16[8,8], index: 1, kind: input, shape index: {}]   ;;  %s1772_s2 = inlined_call_operand.hbm [shape: f32[1,8], index: 2, kind: input, shape index: {}]   ;;  %s1773_s3 = inlined_call_operand.vmem [shape: bf16[16,8], index: 3, kind: input, shape index: {}]   ;;  %s1774_s4 = inlined_call_operand.hbm [shape: f32[1,8], index: 4, kind: input, shape index: {}]   ;;  %s1775_s5 = inlined_call_operand.hbm [shape: bf16[4,8], index: 5, kind: input, shape index: {}]   ;;  %s1776_s6 = inlined_call_operand.hbm [shape: f32[1,8], index: 6, kind: input, shape index: {}]   ;;  %s1777_s7 = inlined_call_operand.vmem [shape: bf16[16,8], index: 7, kind: input, shape index: {}]   ;;  %s1778_s8 = inlined_call_operand.vmem [shape: f32[1,8], index: 8, kind: input, shape index: {}]   ;;  %s1779_s9 = inlined_call_operand.vmem [shape: bf16[16,8], index: 9, kind: input, shape index: {}]   ;;  %s1780_s10 = inlined_call_operand.vmem [shape: f32[1,8], index: 10, kind: input, shape index: {}]   ;;  %s1781_s11 = inlined_call_operand.vmem [shape: bf16[16,16], index: 11, kind: input, shape index: {}]   ;;  %s1782_s12 = inlined_call_operand.vmem [shape: f32[1,16], index: 12, kind: input, shape index: {}]   ;;  %s1783_s13 = inlined_call_operand.vmem [shape: bf16[32,16], index: 13, kind: input, shape index: {}]   ;;  %s1784_s14 = inlined_call_operand.vmem [shape: f32[1,16], index: 14, kind: input, shape index: {}]   ;;  %s1785_s15 = inlined_call_operand.vmem [shape: bf16[8,16], index: 15, kind: input, shape index: {}]   ;;  %s1786_s16 = inlined_call_operand.vmem [shape: f32[1,16], index: 16, kind: input, shape index: {}]   ;;  %s1787_s17 = inlined_call_operand.vmem [shape: f32[16,3], index: 17, kind: input, shape index: {}]   ;;  %s1788_s18 = inlined_call_operand.vmem [shape: f32[1,3], index: 18, kind: input, shape index: {}]   ;;  %s1789_s19 = inlined_call_operand.hbm [shape: f32[2,3], index: 19, kind: output, shape index: {}]  }
   0x1   :  { %1793 = sst [smem:[#allocation17_spill]] %s1770_s0 }
   0x2   :  { %1794 = sst [smem:[#allocation18_spill]] %s1771_s1 }
   0x3   :  { %1795 = sst [smem:[#allocation19_spill]] %s1772_s2 }
   0x4   :  { %1796 = sst [smem:[#allocation20_spill]] %s1773_s3 }
   0x5   :  { %24 = vsyncpa [#allocation4], 0 }
   0x6   :  { %25 = vsyncpa [#allocation7], 0 }
   0x7   :  { %26 = vsyncpa [#allocation10], 0 }
   0x8   :  { %27 = vsyncpa [#allocation5], 0  ;;  %s1399_s0 = smov [#allocation6]   ;;  %s1400_s20 = smov [#allocation9]  }
   0x9   :  { %s46_s30 = sshll.u32 %s1399_s0, 4  ;;  %s68_s21 = sshll.u32 %s1400_s20, 4  ;;  %s47_s30 = int_to_ptr.vmem [resolvable:$true] %s46_s30  ;;  %s69_s21 = int_to_ptr.vmem [resolvable:$true] %s68_s21 }
   0xa   :  { %s1797_s2 = sld [smem:[#allocation19_spill]] }
  0x10   :  { %s1259_s23 = scalar_lea.hbm %s1797_s2, 16 }
  0x11   :  { %p1260_p0 = scmp.ne.s32.totalorder %s1797_s2, %s1259_s23  ;;  %p1263_p1 = scmp.lt.u32.totalorder %s1259_s23, %s1797_s2 }
  0x13   :  { %p1265_p2 = pnand %p1263_p1, %p1260_p0 }
  0x15   :  { %1268 = shalt.err (!%p1265_p2)
}
  0x16   :  { %s1269_s27 = scalar_lea.vmem %s47_s30, 16  ;;  %s1273_s28 = scalar_lea.vmem %s47_s30, 32 }
  0x17   :  { %p1270_p3 = scmp.ne.s32.totalorder %s47_s30, %s1269_s27  ;;  %p1274_p4 = scmp.lt.s32.totalorder %s47_s30, %s47_s30 }
  0x18   :  { %p1275_p5 = scmp.lt.s32.totalorder %s1273_s28, %s1269_s27 }
  0x1a   :  { %p1276_p6 = por %p1275_p5, %p1274_p4 }
  0x1c   :  { %p1277_p7 = pnand %p1276_p6, %p1270_p3 }
  0x1e   :  { %1280 = shalt.err (!%p1277_p7)
}
  0x1f   :  { %49 = dma.hbm_to_vmem [thread:$0]  %s1797_s2, 16, %s47_s30, [#allocation7]  }
  0x20   :  { %s1281_s22 = scalar_lea.hbm %s1775_s5, 32 }
  0x21   :  { %p1282_p8 = scmp.ne.s32.totalorder %s1775_s5, %s1281_s22  ;;  %p1285_p9 = scmp.lt.u32.totalorder %s1281_s22, %s1775_s5 }
  0x23   :  { %p1287_p10 = pnand %p1285_p9, %p1282_p8 }
  0x25   :  { %1290 = shalt.err (!%p1287_p10)
}
  0x26   :  { %s1291_s26 = scalar_lea.vmem %s69_s21, 32  ;;  %p1296_p12 = scmp.lt.s32.totalorder %s69_s21, %s69_s21 }
  0x27   :  { %p1292_p11 = scmp.ne.s32.totalorder %s69_s21, %s1291_s26  ;;  %p1297_p13 = scmp.lt.s32.totalorder %s1291_s26, %s1291_s26 }
  0x29   :  { %p1298_p0 = por %p1297_p13, %p1296_p12 }
  0x2b   :  { %p1299_p1 = pnand %p1298_p0, %p1292_p11 }
  0x2d   :  { %1302 = shalt.err (!%p1299_p1)
}
  0x2e   :  { %71 = dma.hbm_to_vmem [thread:$0]  %s1775_s5, 32, %s69_s21, [#allocation10]  }
  0x2f   :  { %s1401_s27 = smov [#allocation3]   ;;  %s1402_s29 = smov [#allocation8]  }
  0x30   :  { %s36_s28 = sshll.u32 %s1401_s27, 4  ;;  %s58_s0 = sshll.u32 %s1402_s29, 4  ;;  %s37_s28 = int_to_ptr.vmem [resolvable:$true] %s36_s28  ;;  %s59_s0 = int_to_ptr.vmem [resolvable:$true] %s58_s0 }
  0x31   :  { %s1798_s22 = sld [smem:[#allocation18_spill]] }
  0x37   :  { %s1303_s24 = scalar_lea.hbm %s1798_s22, 64 }
  0x38   :  { %p1304_p2 = scmp.ne.s32.totalorder %s1798_s22, %s1303_s24  ;;  %p1307_p3 = scmp.lt.u32.totalorder %s1303_s24, %s1798_s22 }
  0x3a   :  { %p1309_p4 = pnand %p1307_p3, %p1304_p2 }
  0x3c   :  { %1312 = shalt.err (!%p1309_p4)
}
  0x3d   :  { %s1313_s5 = scalar_lea.vmem %s37_s28, 64  ;;  %p1318_p6 = scmp.lt.s32.totalorder %s37_s28, %s37_s28 }
  0x3e   :  { %p1314_p5 = scmp.ne.s32.totalorder %s37_s28, %s1313_s5  ;;  %p1319_p7 = scmp.lt.s32.totalorder %s1313_s5, %s1313_s5 }
  0x40   :  { %p1320_p8 = por %p1319_p7, %p1318_p6 }
  0x42   :  { %p1321_p9 = pnand %p1320_p8, %p1314_p5 }
  0x44   :  { %1324 = shalt.err (!%p1321_p9)
}
  0x45   :  { %39 = dma.hbm_to_vmem [thread:$0]  %s1798_s22, 64, %s37_s28, [#allocation4]  }
  0x46   :  { %s1325_s29 = scalar_lea.hbm %s1774_s4, 16 }
  0x47   :  { %p1326_p10 = scmp.ne.s32.totalorder %s1774_s4, %s1325_s29  ;;  %p1329_p11 = scmp.lt.u32.totalorder %s1325_s29, %s1774_s4 }
  0x49   :  { %p1331_p12 = pnand %p1329_p11, %p1326_p10 }
  0x4b   :  { %1334 = shalt.err (!%p1331_p12)
}
  0x4c   :  { %s1335_s25 = scalar_lea.vmem %s59_s0, 16  ;;  %s1339_s3 = scalar_lea.vmem %s59_s0, 32 }
  0x4d   :  { %p1336_p13 = scmp.ne.s32.totalorder %s59_s0, %s1335_s25  ;;  %p1340_p0 = scmp.lt.s32.totalorder %s59_s0, %s59_s0 }
  0x4e   :  { %p1341_p1 = scmp.lt.s32.totalorder %s1339_s3, %s1335_s25 }
  0x50   :  { %p1342_p2 = por %p1341_p1, %p1340_p0 }
  0x52   :  { %p1343_p3 = pnand %p1342_p2, %p1336_p13 }
  0x54   :  { %1346 = shalt.err (!%p1343_p3)
}
  0x55   :  { %61 = dma.hbm_to_vmem [thread:$0]  %s1774_s4, 16, %s59_s0, [#allocation7]  }
  0x56   :  { %s1403_s26 = smov [#allocation11]   ;;  %s1347_s2 = scalar_lea.hbm %s1776_s6, 16 }
  0x57   :  { %s78_s5 = sshll.u32 %s1403_s26, 4  ;;  %p1348_p4 = scmp.ne.s32.totalorder %s1776_s6, %s1347_s2  ;;  %s79_s5 = int_to_ptr.vmem [resolvable:$true] %s78_s5 }
  0x58   :  { %p1351_p5 = scmp.lt.u32.totalorder %s1347_s2, %s1776_s6 }
  0x5a   :  { %p1353_p6 = pnand %p1351_p5, %p1348_p4 }
  0x5c   :  { %1356 = shalt.err (!%p1353_p6)
}
  0x5d   :  { %s1357_s24 = scalar_lea.vmem %s79_s5, 16  ;;  %s1361_s4 = scalar_lea.vmem %s79_s5, 32 }
  0x5e   :  { %p1358_p7 = scmp.ne.s32.totalorder %s79_s5, %s1357_s24  ;;  %p1362_p8 = scmp.lt.s32.totalorder %s79_s5, %s79_s5 }
  0x5f   :  { %p1363_p9 = scmp.lt.s32.totalorder %s1361_s4, %s1357_s24 }
  0x61   :  { %p1364_p10 = por %p1363_p9, %p1362_p8 }
  0x63   :  { %p1365_p11 = pnand %p1364_p10, %p1358_p7 }
  0x65   :  { %1368 = shalt.err (!%p1365_p11)
}
  0x66   :  { %81 = dma.hbm_to_vmem [thread:$0]  %s1776_s6, 16, %s79_s5, [#allocation10]  }
  0x67   :  { %1391 = dma.done.wait [#allocation4], 64  }
  0x68   :  { %1392 = vsyncadd [#allocation4], 4294967232 }
  0x69   :  { %1393 = dma.done.wait [#allocation7], 32  }
  0x6a   :  { %1394 = vsyncadd [#allocation7], 4294967264 }
  0x6b   :  { %1395 = dma.done.wait [#allocation10], 48  }
  0x6c   :  { %1396 = vsyncadd [#allocation10], 4294967248  ;;  %vm122_vm0 = vcmask 130048   ;;  %vm125_vm1 = vcmask 125952   ;;  %v1404_v0 = vmov 0.0   ;;  %vm134_vm2 = vcmask 31744  }
  0x6d   :  { %123 = vst.msk [vmem:[#allocation2] sm:$0xff] %vm122_vm0, %v1404_v0  ;;  %124 = vst.msk [vmem:[#allocation2 + $0x8] sm:$0xff] %vm122_vm0, %v1404_v0  ;;  %s1799_s3 = sld [smem:[#allocation17_spill]]  ;;  %v169_v5 = vld [vmem:[#allocation3] sm:$0xf]  ;;  %vm184_vm3 = vcmask 1043456  }
  0x6e   :  { %126 = vst.msk [vmem:[#allocation2 + $0x10] sm:$0xf] %vm125_vm1, %v1404_v0  ;;  %129 = vst.msk [vmem:[#allocation2 + $0x28] sm:$0xf] %vm125_vm1, %v1404_v0  ;;  %1174 = vmatprep.subr.msk.bf16.mxu0 %vm184_vm3, %v169_v5  ;;  %v186_v6 = vsel %vm184_vm3, %v169_v5, 0  ;;  %s1405_s2 = smov 4  }
  0x6f   :  { %127 = vst.msk [vmem:[#allocation2 + $0x18] sm:$0xff] %vm122_vm0, %v1404_v0  ;;  %128 = vst.msk [vmem:[#allocation2 + $0x20] sm:$0xff] %vm122_vm0, %v1404_v0  ;;  %1115 = vmatpush3.bf16.msra.mxu0 %v186_v6  ;;  %vm177_vm4 = vcmask 64512   ;;  %v1053_v29 = vld [vmem:[#allocation6] ss:$0 sm:$0xff]  ;;  %vm365_vm5 = vcmask 1041408  }
  0x70   :  { %v351_v41 = vld [vmem:[#allocation9] sm:$0x3]  ;;  %s1800_s20 = sld [smem:[#allocation20_spill]]  ;;  %s1406_s1 = smov 8   ;;  %vm815_vm6 = vcmask 261120   ;;  %vm1409_vm7 = vmmov 0  }
  0x71   :  { %1175 = vmatprep.subr.msk.bf16.mxu0 %vm365_vm5, %v351_v41  ;;  %v367_v43 = vsel %vm365_vm5, %v351_v41, 0  ;;  %vm954_vm8 = vcmask 1041409   ;;  %vm1034_vm9 = vcmask 17408  }
  0x73   :  { %v1584_v1 = vld [vmem:[%s1799_s3] sm:$0xff]  ;;  %v1589_v2 = vld [vmem:[%s1799_s3 + $0x8] sm:$0xff]  ;;  %v1594_v3 = vld [vmem:[%s1799_s3 + $0x10] sm:$0xff] }
  0x74   :  { %135 = vst.msk [vmem:[#allocation2 + $0x4] sm:$0xff] %vm134_vm2, %v1584_v1  ;;  %136 = vst.msk [vmem:[#allocation2 + $0xc] sm:$0xff] %vm134_vm2, %v1589_v2  ;;  %v1603_v4 = vld [vmem:[%s1799_s3 + $0x18] sm:$0xff]  ;;  %v349_v45 = vpack.c.bf16 %v1589_v2, %v1584_v1 }
  0x75   :  { %137 = vst.msk [vmem:[#allocation2 + $0x1c] sm:$0xff] %vm134_vm2, %v1594_v3  ;;  %138 = vst.msk [vmem:[#allocation2 + $0x24] sm:$0xff] %vm134_vm2, %v1603_v4  ;;  %v350_v46 = vpack.c.bf16 %v1603_v4, %v1594_v3 }
  0x76   :  { %v1249_v44 = vld [vmem:[%s1800_s20] sm:$0xff]  }
  0x77   :  { %1120 = vmatprep.subr.bf16.mxu1 %v1249_v44 }
  0x78   :  { %1121 = vmatpush3.bf16.msra.mxu1 %v1249_v44 }
  0x7b   :  { %v143_v7 = vld [vmem:[#allocation2 + $0x4] sm:$0xff]  ;;  %v144_v8 = vld [vmem:[#allocation2 + $0xc] sm:$0xff] }
  0x7c   :  { %v145_v9 = vld [vmem:[#allocation2 + $0x1c] sm:$0xff]  ;;  %v1189_v10 = vpack.i.bf16 %v144_v8, %v143_v7  ;;  %v146_v11 = vld [vmem:[#allocation2 + $0x24] sm:$0xff] }
  0x7d   :  { %v1194_v12 = vpack.i.bf16 %v146_v11, %v145_v9  ;;  %v139_v14 = vld [vmem:[#allocation2 + $0x3] sm:$0xff]  ;;  %v140_v15 = vld [vmem:[#allocation2 + $0xb] sm:$0xff]  ;;  %v141_v20 = vld [vmem:[#allocation2 + $0x1b] sm:$0xff] }
  0x7e   :  { %1190 = vrot.lane.b32.xlu0 %v1189_v10, %s1405_s2  ;;  %v142_v21 = vld [vmem:[#allocation2 + $0x23] sm:$0xff]  ;;  %v1060_v11 = vld [vmem:[#allocation11] ss:$0 sm:$0xff] }
  0x7f   :  { %v1250_v10 = vld [vmem:[%s1777_s7] sm:$0xff]  }
  0x80   :  { %1132 = vmatprep.subr.bf16.mxu1 %v1250_v10 }
  0x82   :  { %1195 = vrot.lane.b32.xlu0 %v1194_v12, %s1405_s2  ;;  %v1056_v12 = vld [vmem:[#allocation8] ss:$0 sm:$0xff] }
  0xf0   :  { %v1191_v13 = vpop.permute.xlu0 %1190 }
  0xf1   :  { %v1193_v16 = vunpack.i.h.bf16 %v1191_v13  ;;  %v1192_v17 = vunpack.i.l.bf16 %v1191_v13 }
  0xf3   :  { %v163_v18 = vsel %vm134_vm2, %v139_v14, %v1192_v17  ;;  %v164_v19 = vsel %vm134_vm2, %v140_v15, %v1193_v16 }
  0xf4   :  { %v1196_v22 = vpop.permute.xlu0 %1195  ;;  %v167_v23 = vpack.c.bf16 %v164_v19, %v163_v18 }
  0xf5   :  { %v1198_v24 = vunpack.i.h.bf16 %v1196_v22  ;;  %v1197_v25 = vunpack.i.l.bf16 %v1196_v22 }
  0xf6   :  { %1116 = vmatprep.mubr.msk.bf16.mxu0 %vm177_vm4, %v167_v23 }
  0xf7   :  { %v166_v26 = vsel %vm134_vm2, %v142_v21, %v1198_v24  ;;  %v165_v27 = vsel %vm134_vm2, %v141_v20, %v1197_v25 }
  0xf8   :  { %v168_v28 = vpack.c.bf16 %v166_v26, %v165_v27 }
  0xfa   :  { %1117 = vmatmul.mubr.msk.bf16.vlgmr.msra.gmra.mrb[0].mxu0 %vm177_vm4, %v168_v28 }
  0xfb   :  { %1127 = vmatpush3.bf16.msra.mxu0 %v367_v43  ;;  %1128 = vmatprep.mubr.msk.bf16.mxu0 %vm134_vm2, %v349_v45 }
 0x102   :  { %1129 = vmatmul.mubr.msk.bf16.vlgmr.msra.gmra.mrb[4].mxu0 %vm134_vm2, %v350_v46 }
 0x1cd   :  { %v1118_v30 = vpop.f32.mrb[0].mxu0 }
 0x1ce   :  { %v231_v31 = vadd.f32 %v1118_v30, %v1053_v29  ;;  %v222_v32 = vpop.f32.mrb[1].mxu0 }
 0x1cf   :  { %v223_v33 = vadd.f32 %v1053_v29, %v222_v32  ;;  %v1119_v34 = vpop.f32.mrb[2].mxu0 }
 0x1d0   :  { %v239_v35 = vmax.f32 %v231_v31, 0.0  ;;  %v234_v36 = vadd.f32 %v1119_v34, %v1053_v29  ;;  %v225_v37 = vpop.f32.mrb[3].mxu0 }
 0x1d1   :  { %v237_v38 = vmax.f32 %v223_v33, 0.0  ;;  %v226_v39 = vadd.f32 %v1053_v29, %v225_v37 }
 0x1d2   :  { %243 = vst.msk [vmem:[#allocation2 + $0x1c] sm:$0xff] %vm177_vm4, %v239_v35  ;;  %v240_v40 = vmax.f32 %v234_v36, 0.0 }
 0x1d3   :  { %241 = vst.msk [vmem:[#allocation2 + $0x4] sm:$0xff] %vm177_vm4, %v237_v38  ;;  %v238_v42 = vmax.f32 %v226_v39, 0.0 }
 0x1d4   :  { %244 = vst.msk [vmem:[#allocation2 + $0x24] sm:$0xff] %vm177_vm4, %v240_v40 }
 0x1d5   :  { %242 = vst.msk [vmem:[#allocation2 + $0xc] sm:$0xff] %vm177_vm4, %v238_v42  ;;  %v1130_v6 = vpop.f32.mrb[4].mxu0 }
 0x1d6   :  { %v403_v7 = vpop.f32.mrb[5].mxu0  ;;  %v412_v14 = vadd.f32 %v1130_v6, %v1060_v11 }
 0x1d7   :  { %v1131_v8 = vpop.f32.mrb[6].mxu0  ;;  %v404_v17 = vadd.f32 %v1060_v11, %v403_v7 }
 0x1d8   :  { %v406_v9 = vpop.f32.mrb[7].mxu0  ;;  %v415_v26 = vadd.f32 %v1131_v8, %v1060_v11 }
 0x1d9   :  { %v251_v51 = vld [vmem:[#allocation2 + $0x1c] sm:$0xff]  ;;  %v407_v29 = vadd.f32 %v1060_v11, %v406_v9 }
 0x1da   :  { %v249_v47 = vld [vmem:[#allocation2 + $0x4] sm:$0xff]  ;;  %v247_v1 = vld [vmem:[#allocation2 + $0x1b] sm:$0xff] }
 0x1db   :  { %v252_v50 = vld [vmem:[#allocation2 + $0x24] sm:$0xff] }
 0x1dc   :  { %v250_v48 = vld [vmem:[#allocation2 + $0xc] sm:$0xff]  ;;  %v1204_v52 = vpack.i.bf16 %v252_v50, %v251_v51  ;;  %v245_v56 = vld [vmem:[#allocation2 + $0x3] sm:$0xff] }
 0x1dd   :  { %v1199_v49 = vpack.i.bf16 %v250_v48, %v249_v47  ;;  %v246_v57 = vld [vmem:[#allocation2 + $0xb] sm:$0xff]  ;;  %v248_v2 = vld [vmem:[#allocation2 + $0x23] sm:$0xff] }
 0x1df   :  { %1200 = vrot.lane.b32.xlu1 %v1199_v49, %s1406_s1 }
 0x1e3   :  { %1205 = vrot.lane.b32.xlu1 %v1204_v52, %s1406_s1 }
 0x251   :  { %v1201_v53 = vpop.permute.xlu1 %1200 }
 0x252   :  { %v1203_v54 = vunpack.i.h.bf16 %v1201_v53  ;;  %v1202_v55 = vunpack.i.l.bf16 %v1201_v53 }
 0x254   :  { %v269_v58 = vsel %vm177_vm4, %v245_v56, %v1202_v55  ;;  %v270_v59 = vsel %vm177_vm4, %v246_v57, %v1203_v54 }
 0x255   :  { %v1206_v60 = vpop.permute.xlu1 %1205  ;;  %v273_v61 = vpack.c.bf16 %v270_v59, %v269_v58  ;;  %v1251_v59 = vld [vmem:[%s1779_s9] sm:$0xff]  }
 0x256   :  { %v1208_v62 = vunpack.i.h.bf16 %v1206_v60  ;;  %v1207_v63 = vunpack.i.l.bf16 %v1206_v60  ;;  %1138 = vmatprep.subr.bf16.mxu0 %v1251_v59  ;;  %v1063_v60 = vld [vmem:[%s1778_s8] ss:$0 sm:$0xff] }
 0x257   :  { %1122 = vmatprep.mubr.msk.bf16.mxu1 %vm122_vm0, %v273_v61  ;;  %1139 = vmatpush3.bf16.msra.mxu0 %v1251_v59 }
 0x258   :  { %v272_v3 = vsel %vm177_vm4, %v248_v2, %v1208_v62  ;;  %v271_v4 = vsel %vm177_vm4, %v247_v1, %v1207_v63 }
 0x259   :  { %v274_v5 = vpack.c.bf16 %v272_v3, %v271_v4 }
 0x25b   :  { %1123 = vmatmul.mubr.msk.bf16.vlgmr.msra.gmra.mrb[0].mxu1 %vm122_vm0, %v274_v5 }
 0x25c   :  { %1133 = vmatpush3.bf16.msra.mxu1 %v1250_v10 }
 0x32e   :  { %v1124_v13 = vpop.f32.mrb[0].mxu1 }
 0x32f   :  { %v339_v15 = vadd.f32 %v1124_v13, %v1056_v12  ;;  %v330_v16 = vpop.f32.mrb[1].mxu1 }
 0x330   :  { %v331_v18 = vadd.f32 %v1056_v12, %v330_v16  ;;  %v1125_v19 = vpop.f32.mrb[2].mxu1 }
 0x331   :  { %v347_v20 = vmax.f32 %v339_v15, 0.0  ;;  %v342_v21 = vadd.f32 %v1125_v19, %v1056_v12  ;;  %v333_v22 = vpop.f32.mrb[3].mxu1 }
 0x332   :  { %v345_v23 = vmax.f32 %v331_v18, 0.0  ;;  %v334_v24 = vadd.f32 %v1056_v12, %v333_v22 }
 0x333   :  { %v1641_v25 = vadd.f32 %v412_v14, %v347_v20  ;;  %v348_v27 = vmax.f32 %v342_v21, 0.0 }
 0x334   :  { %v1643_v28 = vadd.f32 %v404_v17, %v345_v23  ;;  %v346_v30 = vmax.f32 %v334_v24, 0.0 }
 0x335   :  { %v424_v31 = vmax.f32 %v1641_v25, 0.0  ;;  %v1646_v32 = vadd.f32 %v415_v26, %v348_v27 }
 0x336   :  { %v422_v33 = vmax.f32 %v1643_v28, 0.0  ;;  %v1649_v34 = vadd.f32 %v407_v29, %v346_v30 }
 0x337   :  { %428 = vst.msk [vmem:[#allocation2 + $0x1c] sm:$0xff] %vm177_vm4, %v424_v31  ;;  %v425_v35 = vmax.f32 %v1646_v32, 0.0  ;;  %v873_v32 = vld [vmem:[%s1785_s15] sm:$0xf] }
 0x338   :  { %426 = vst.msk [vmem:[#allocation2 + $0x4] sm:$0xff] %vm177_vm4, %v422_v33  ;;  %v423_v36 = vmax.f32 %v1649_v34, 0.0 }
 0x339   :  { %429 = vst.msk [vmem:[#allocation2 + $0x24] sm:$0xff] %vm177_vm4, %v425_v35 }
 0x33a   :  { %427 = vst.msk [vmem:[#allocation2 + $0xc] sm:$0xff] %vm177_vm4, %v423_v36 }
 0x33e   :  { %v436_v37 = vld [vmem:[#allocation2 + $0x1c] sm:$0xff] }
 0x33f   :  { %v434_v40 = vld [vmem:[#allocation2 + $0x4] sm:$0xff]  ;;  %v432_v47 = vld [vmem:[#allocation2 + $0x1a] sm:$0xff] }
 0x340   :  { %v437_v38 = vld [vmem:[#allocation2 + $0x24] sm:$0xff] }
 0x341   :  { %v1214_v39 = vpack.i.bf16 %v437_v38, %v436_v37  ;;  %v435_v41 = vld [vmem:[#allocation2 + $0xc] sm:$0xff]  ;;  %v433_v48 = vld [vmem:[#allocation2 + $0x22] sm:$0xff] }
 0x342   :  { %v1209_v42 = vpack.i.bf16 %v435_v41, %v434_v40  ;;  %v430_v53 = vld [vmem:[#allocation2 + $0x2] sm:$0xff]  ;;  %v431_v54 = vld [vmem:[#allocation2 + $0xa] sm:$0xff]  ;;  %v1067_v41 = vld [vmem:[%s1780_s10] ss:$0 sm:$0xff] }
 0x343   :  { %1215 = vrot.lane.b32.xlu1 %v1214_v39, %s1406_s1  ;;  %v1252_v40 = vld [vmem:[%s1781_s11] sm:$0xff]  }
 0x344   :  { %1210 = vrot.lane.b32.xlu0 %v1209_v42, %s1406_s1  ;;  %1144 = vmatprep.subr.bf16.mxu1 %v1252_v40 }
 0x3b5   :  { %v1216_v43 = vpop.permute.xlu1 %1215 }
 0x3b6   :  { %v1218_v44 = vunpack.i.h.bf16 %v1216_v43  ;;  %v1217_v45 = vunpack.i.l.bf16 %v1216_v43  ;;  %v1211_v46 = vpop.permute.xlu0 %1210 }
 0x3b7   :  { %v1213_v49 = vunpack.i.h.bf16 %v1211_v46  ;;  %v1212_v50 = vunpack.i.l.bf16 %v1211_v46 }
 0x3b8   :  { %v456_v51 = vsel %vm177_vm4, %v432_v47, %v1217_v45  ;;  %v457_v52 = vsel %vm177_vm4, %v433_v48, %v1218_v44 }
 0x3b9   :  { %v454_v55 = vsel %vm177_vm4, %v430_v53, %v1212_v50  ;;  %v455_v56 = vsel %vm177_vm4, %v431_v54, %v1213_v49  ;;  %v459_v58 = vpack.c.bf16 %v457_v52, %v456_v51 }
 0x3ba   :  { %v458_v57 = vpack.c.bf16 %v455_v56, %v454_v55 }
 0x3bc   :  { %1134 = vmatprep.mubr.msk.bf16.mxu1 %vm122_vm0, %v458_v57 }
 0x3bd   :  { %1135 = vmatmul.mubr.msk.bf16.vlgmr.msra.gmra.mrb[4].mxu1 %vm122_vm0, %v459_v58 }
 0x3be   :  { %1145 = vmatpush3.bf16.msra.mxu1 %v1252_v40 }
 0x3bf   :  { %1176 = vmatprep.subr.msk.bf16.mxu1 %vm184_vm3, %v873_v32 }
 0x490   :  { %v1136_v61 = vpop.f32.mrb[4].mxu1 }
 0x491   :  { %v524_v62 = vadd.f32 %v1136_v61, %v1063_v60  ;;  %v515_v63 = vpop.f32.mrb[5].mxu1 }
 0x492   :  { %v516_v1 = vadd.f32 %v1063_v60, %v515_v63  ;;  %v1137_v2 = vpop.f32.mrb[6].mxu1 }
 0x493   :  { %v532_v3 = vmax.f32 %v524_v62, 0.0  ;;  %v527_v4 = vadd.f32 %v1137_v2, %v1063_v60  ;;  %v518_v5 = vpop.f32.mrb[7].mxu1 }
 0x494   :  { %v530_v6 = vmax.f32 %v516_v1, 0.0  ;;  %v519_v7 = vadd.f32 %v1063_v60, %v518_v5 }
 0x495   :  { %536 = vst.msk [vmem:[#allocation2 + $0x1c] sm:$0xff] %vm177_vm4, %v532_v3  ;;  %v533_v8 = vmax.f32 %v527_v4, 0.0 }
 0x496   :  { %534 = vst.msk [vmem:[#allocation2 + $0x4] sm:$0xff] %vm177_vm4, %v530_v6  ;;  %v531_v9 = vmax.f32 %v519_v7, 0.0 }
 0x497   :  { %537 = vst.msk [vmem:[#allocation2 + $0x24] sm:$0xff] %vm177_vm4, %v533_v8 }
 0x498   :  { %535 = vst.msk [vmem:[#allocation2 + $0xc] sm:$0xff] %vm177_vm4, %v531_v9 }
 0x49c   :  { %v544_v10 = vld [vmem:[#allocation2 + $0x1c] sm:$0xff] }
 0x49d   :  { %v542_v13 = vld [vmem:[#allocation2 + $0x4] sm:$0xff]  ;;  %v540_v20 = vld [vmem:[#allocation2 + $0x1a] sm:$0xff] }
 0x49e   :  { %v545_v11 = vld [vmem:[#allocation2 + $0x24] sm:$0xff] }
 0x49f   :  { %v1224_v12 = vpack.i.bf16 %v545_v11, %v544_v10  ;;  %v543_v14 = vld [vmem:[#allocation2 + $0xc] sm:$0xff]  ;;  %v541_v21 = vld [vmem:[#allocation2 + $0x22] sm:$0xff] }
 0x4a0   :  { %v1219_v15 = vpack.i.bf16 %v543_v14, %v542_v13  ;;  %v538_v27 = vld [vmem:[#allocation2 + $0x2] sm:$0xff]  ;;  %v539_v29 = vld [vmem:[#allocation2 + $0xa] sm:$0xff] }
 0x4a1   :  { %1225 = vrot.lane.b32.xlu1 %v1224_v12, %s1406_s1 }
 0x4a2   :  { %1220 = vrot.lane.b32.xlu0 %v1219_v15, %s1406_s1 }
 0x513   :  { %v1226_v16 = vpop.permute.xlu1 %1225 }
 0x514   :  { %v1228_v17 = vunpack.i.h.bf16 %v1226_v16  ;;  %v1227_v18 = vunpack.i.l.bf16 %v1226_v16  ;;  %v1221_v19 = vpop.permute.xlu0 %1220  ;;  %v888_v16 = vsel %vm184_vm3, %v873_v32, 0 }
 0x515   :  { %v1223_v22 = vunpack.i.h.bf16 %v1221_v19  ;;  %v1222_v23 = vunpack.i.l.bf16 %v1221_v19 }
 0x516   :  { %v564_v24 = vsel %vm177_vm4, %v540_v20, %v1227_v18  ;;  %v565_v26 = vsel %vm177_vm4, %v541_v21, %v1228_v17  ;;  %v1253_v17 = vld [vmem:[%s1783_s13] sm:$0xff]  }
 0x517   :  { %v562_v30 = vsel %vm177_vm4, %v538_v27, %v1222_v23  ;;  %v563_v37 = vsel %vm177_vm4, %v539_v29, %v1223_v22  ;;  %v567_v39 = vpack.c.bf16 %v565_v26, %v564_v24  ;;  %1150 = vmatprep.subr.bf16.mxu0 %v1253_v17  ;;  %v1071_v18 = vld [vmem:[%s1782_s12] ss:$0 sm:$0xff]  ;;  %s1407_s12 = smov 16  }
 0x518   :  { %v566_v38 = vpack.c.bf16 %v563_v37, %v562_v30 }
 0x51a   :  { %1140 = vmatprep.mubr.msk.bf16.mxu0 %vm122_vm0, %v566_v38  ;;  %v1254_v38 = vld [vmem:[%s1783_s13 + $0x8] sm:$0xff]  }
 0x51b   :  { %1141 = vmatmul.mubr.msk.bf16.vlgmr.msra.gmra.mrb[8].mxu0 %vm122_vm0, %v567_v39 }
 0x51c   :  { %1151 = vmatpush3.bf16.msra.mxu0 %v1253_v17  ;;  %v1083_v17 = vld [vmem:[%s1788_s18] ss:$0 sm:$0xff] }
 0x51d   :  { %1152 = vmatprep.subr.bf16.mxu0 %v1254_v38 }
 0x520   :  { %1153 = vmatpush3.bf16.msra.mxu0 %v1254_v38 }
 0x5ee   :  { %v1142_v42 = vpop.f32.mrb[8].mxu0 }
 0x5ef   :  { %v632_v43 = vadd.f32 %v1142_v42, %v1067_v41  ;;  %v623_v44 = vpop.f32.mrb[9].mxu0 }
 0x5f0   :  { %v624_v45 = vadd.f32 %v1067_v41, %v623_v44  ;;  %v1143_v46 = vpop.f32.mrb[10].mxu0 }
 0x5f1   :  { %v640_v47 = vmax.f32 %v632_v43, 0.0  ;;  %v635_v48 = vadd.f32 %v1143_v46, %v1067_v41  ;;  %v626_v49 = vpop.f32.mrb[11].mxu0 }
 0x5f2   :  { %v638_v50 = vmax.f32 %v624_v45, 0.0  ;;  %v627_v51 = vadd.f32 %v1067_v41, %v626_v49 }
 0x5f3   :  { %v644_v52 = vadd.f32 %v640_v47, %v424_v31  ;;  %v641_v53 = vmax.f32 %v635_v48, 0.0 }
 0x5f4   :  { %v642_v54 = vadd.f32 %v638_v50, %v422_v33  ;;  %v639_v55 = vmax.f32 %v627_v51, 0.0 }
 0x5f5   :  { %v648_v56 = vmax.f32 %v644_v52, 0.0  ;;  %v645_v57 = vadd.f32 %v641_v53, %v425_v35 }
 0x5f6   :  { %v646_v58 = vmax.f32 %v642_v54, 0.0  ;;  %v643_v59 = vadd.f32 %v639_v55, %v423_v36 }
 0x5f7   :  { %652 = vst.msk [vmem:[#allocation2 + $0x1c] sm:$0xff] %vm177_vm4, %v648_v56  ;;  %v649_v60 = vmax.f32 %v645_v57, 0.0 }
 0x5f8   :  { %650 = vst.msk [vmem:[#allocation2 + $0x4] sm:$0xff] %vm177_vm4, %v646_v58  ;;  %v647_v25 = vmax.f32 %v643_v59, 0.0 }
 0x5f9   :  { %v872_v31 = vpack.c.bf16 %v649_v60, %v648_v56  ;;  %653 = vst.msk [vmem:[#allocation2 + $0x24] sm:$0xff] %vm177_vm4, %v649_v60 }
 0x5fa   :  { %v871_v28 = vpack.c.bf16 %v647_v25, %v646_v58  ;;  %651 = vst.msk [vmem:[#allocation2 + $0xc] sm:$0xff] %vm177_vm4, %v647_v25 }
 0x5fe   :  { %v660_v33 = vld [vmem:[#allocation2 + $0x1c] sm:$0xff] }
 0x5ff   :  { %v658_v36 = vld [vmem:[#allocation2 + $0x4] sm:$0xff]  ;;  %v656_v4 = vld [vmem:[#allocation2 + $0x18] sm:$0xff] }
 0x600   :  { %v661_v34 = vld [vmem:[#allocation2 + $0x24] sm:$0xff] }
 0x601   :  { %v1234_v35 = vpack.i.bf16 %v661_v34, %v660_v33  ;;  %v659_v61 = vld [vmem:[#allocation2 + $0xc] sm:$0xff]  ;;  %v657_v5 = vld [vmem:[#allocation2 + $0x20] sm:$0xff] }
 0x602   :  { %v1229_v62 = vpack.i.bf16 %v659_v61, %v658_v36  ;;  %v654_v10 = vld [vmem:[#allocation2] sm:$0xff]  ;;  %v655_v11 = vld [vmem:[#allocation2 + $0x8] sm:$0xff]  ;;  %v1408_v61 = vmov 0.0|0.0  }
 0x603   :  { %1235 = vrot.lane.b32.xlu1 %v1234_v35, %s1406_s1  ;;  %v941_v34 = vld [vmem:[%s1787_s17] sm:$0xff]  ;;  %v942_v35 = vld [vmem:[%s1787_s17 + $0x8] sm:$0xff]  ;;  %1171 = vmatprep.subr.bf16.mxu0 %v1408_v61  ;;  %s1410_s17 = smov [#allocation12]  }
 0x604   :  { %1230 = vrot.lane.b32.xlu0 %v1229_v62, %s1406_s1  ;;  %v1172_v36 = vpack.c.bf16 %v942_v35, %v941_v34  ;;  %s1042_s4 = sshll.u32 %s1410_s17, 4  ;;  %s1043_s4 = int_to_ptr.vmem [resolvable:$true] %s1042_s4 }
 0x605   :  { %s1369_s7 = scalar_lea.vmem %s1043_s4, 32  ;;  %p1374_p13 = scmp.lt.s32.totalorder %s1043_s4, %s1043_s4 }
 0x606   :  { %p1370_p12 = scmp.ne.s32.totalorder %s1043_s4, %s1369_s7  ;;  %p1375_p0 = scmp.lt.s32.totalorder %s1369_s7, %s1369_s7 }
 0x608   :  { %p1376_p1 = por %p1375_p0, %p1374_p13 }
 0x60a   :  { %p1377_p2 = pnand %p1376_p1, %p1370_p12 }
 0x675   :  { %v1236_v63 = vpop.permute.xlu1 %1235 }
 0x676   :  { %v1238_v1 = vunpack.i.h.bf16 %v1236_v63  ;;  %v1237_v2 = vunpack.i.l.bf16 %v1236_v63  ;;  %v1231_v3 = vpop.permute.xlu0 %1230  ;;  %v1075_v63 = vld [vmem:[%s1784_s14] ss:$0 sm:$0xff] }
 0x677   :  { %v1233_v6 = vunpack.i.h.bf16 %v1231_v3  ;;  %v1232_v7 = vunpack.i.l.bf16 %v1231_v3 }
 0x678   :  { %v680_v8 = vsel %vm177_vm4, %v656_v4, %v1237_v2  ;;  %v681_v9 = vsel %vm177_vm4, %v657_v5, %v1238_v1  ;;  %v1080_v2 = vld [vmem:[%s1786_s16] ss:$0 sm:$0xff] }
 0x679   :  { %v678_v12 = vsel %vm177_vm4, %v654_v10, %v1232_v7  ;;  %v679_v13 = vsel %vm177_vm4, %v655_v11, %v1233_v6  ;;  %v683_v15 = vpack.c.bf16 %v681_v9, %v680_v8 }
 0x67a   :  { %v682_v14 = vpack.c.bf16 %v679_v13, %v678_v12 }
 0x67c   :  { %1146 = vmatprep.mubr.msk.bf16.mxu1 %vm122_vm0, %v682_v14 }
 0x67d   :  { %1147 = vmatmul.mubr.msk.bf16.vlgmr.msra.gmra.mrb[8].mxu1 %vm122_vm0, %v683_v15 }
 0x67e   :  { %1160 = vmatprep.mubr.msk.bf16.mxu1 %vm177_vm4, %v871_v28  ;;  %1159 = vmatpush3.bf16.msra.mxu1 %v888_v16 }
 0x685   :  { %1161 = vmatmul.mubr.msk.bf16.vlgmr.msra.gmra.mrb[12].mxu1 %vm177_vm4, %v872_v31 }
 0x750   :  { %v1148_v19 = vpop.f32.mrb[8].mxu1 }
 0x751   :  { %v748_v20 = vadd.f32 %v1148_v19, %v1071_v18  ;;  %v739_v21 = vpop.f32.mrb[9].mxu1 }
 0x752   :  { %v740_v22 = vadd.f32 %v1071_v18, %v739_v21  ;;  %v1149_v23 = vpop.f32.mrb[10].mxu1 }
 0x753   :  { %v756_v24 = vmax.f32 %v748_v20, 0.0  ;;  %v751_v26 = vadd.f32 %v1149_v23, %v1071_v18  ;;  %v742_v27 = vpop.f32.mrb[11].mxu1 }
 0x754   :  { %v754_v29 = vmax.f32 %v740_v22, 0.0  ;;  %v743_v30 = vadd.f32 %v1071_v18, %v742_v27 }
 0x755   :  { %760 = vst.msk [vmem:[#allocation2 + $0x1c] sm:$0xff] %vm122_vm0, %v756_v24  ;;  %v757_v37 = vmax.f32 %v751_v26, 0.0 }
 0x756   :  { %758 = vst.msk [vmem:[#allocation2 + $0x4] sm:$0xff] %vm122_vm0, %v754_v29  ;;  %v755_v39 = vmax.f32 %v743_v30, 0.0 }
 0x757   :  { %761 = vst.msk [vmem:[#allocation2 + $0x24] sm:$0xff] %vm122_vm0, %v757_v37 }
 0x758   :  { %759 = vst.msk [vmem:[#allocation2 + $0xc] sm:$0xff] %vm122_vm0, %v755_v39  ;;  %v1162_v40 = vpop.f32.mrb[12].mxu1 }
 0x759   :  { %v924_v41 = vpop.f32.mrb[13].mxu1 }
 0x75a   :  { %v1163_v42 = vpop.f32.mrb[14].mxu1 }
 0x75b   :  { %v926_v43 = vpop.f32.mrb[15].mxu1  ;;  %v934_v7 = vadd.f32 %v1163_v42, %v1080_v2 }
 0x75c   :  { %v768_v44 = vld [vmem:[#allocation2 + $0x1c] sm:$0xff]  ;;  %v927_v9 = vadd.f32 %v1080_v2, %v926_v43 }
 0x75d   :  { %v766_v47 = vld [vmem:[#allocation2 + $0x4] sm:$0xff]  ;;  %v764_v54 = vld [vmem:[#allocation2 + $0x18] sm:$0xff] }
 0x75e   :  { %v769_v45 = vld [vmem:[#allocation2 + $0x24] sm:$0xff] }
 0x75f   :  { %v1244_v46 = vpack.i.bf16 %v769_v45, %v768_v44  ;;  %v767_v48 = vld [vmem:[#allocation2 + $0xc] sm:$0xff]  ;;  %v765_v55 = vld [vmem:[#allocation2 + $0x20] sm:$0xff] }
 0x760   :  { %v1239_v49 = vpack.i.bf16 %v767_v48, %v766_v47  ;;  %v762_v60 = vld [vmem:[#allocation2] sm:$0xff]  ;;  %v763_v25 = vld [vmem:[#allocation2 + $0x8] sm:$0xff] }
 0x761   :  { %1245 = vrot.lane.b32.xlu1 %v1244_v46, %s1407_s12 }
 0x762   :  { %1240 = vrot.lane.b32.xlu0 %v1239_v49, %s1407_s12 }
 0x7d3   :  { %v1246_v50 = vpop.permute.xlu1 %1245 }
 0x7d4   :  { %v1248_v51 = vunpack.i.h.bf16 %v1246_v50  ;;  %v1247_v52 = vunpack.i.l.bf16 %v1246_v50  ;;  %v1241_v53 = vpop.permute.xlu0 %1240 }
 0x7d5   :  { %v1243_v56 = vunpack.i.h.bf16 %v1241_v53  ;;  %v1242_v57 = vunpack.i.l.bf16 %v1241_v53 }
 0x7d6   :  { %v788_v58 = vsel %vm122_vm0, %v764_v54, %v1247_v52  ;;  %v789_v59 = vsel %vm122_vm0, %v765_v55, %v1248_v51 }
 0x7d7   :  { %v786_v31 = vsel %vm122_vm0, %v762_v60, %v1242_v57  ;;  %v787_v28 = vsel %vm122_vm0, %v763_v25, %v1243_v56  ;;  %v791_v33 = vpack.c.bf16 %v789_v59, %v788_v58 }
 0x7d8   :  { %v790_v32 = vpack.c.bf16 %v787_v28, %v786_v31 }
 0x7da   :  { %1154 = vmatprep.mubr.msk.bf16.mxu0 %vm815_vm6, %v790_v32 }
 0x7db   :  { %1155 = vmatmul.mubr.msk.bf16.vlgmr.msra.gmra.mrb[12].mxu0 %vm815_vm6, %v791_v33 }
 0x7dc   :  { %1173 = vmatpush3.bf16.msra.mxu0 %v1172_v36  ;;  %1168 = vmatprep.mubr.msk.f32.mxu0 %vm1409_vm7, %v1404_v0 }
 0x8ae   :  { %v1156_v62 = vpop.f32.mrb[12].mxu0 }
 0x8af   :  { %v856_v1 = vpop.f32.mrb[13].mxu0 }
 0x8b0   :  { %v1157_v3 = vpop.f32.mrb[14].mxu0 }
 0x8b1   :  { %v866_v4 = vadd.f32 %v1157_v3, %v1075_v63  ;;  %v858_v5 = vpop.f32.mrb[15].mxu0 }
 0x8b2   :  { %v859_v6 = vadd.f32 %v1075_v63, %v858_v5 }
 0x8b3   :  { %v870_v8 = vmax.f32 %v866_v4, 0.0 }
 0x8b4   :  { %v869_v10 = vmax.f32 %v859_v6, 0.0 }
 0x8b5   :  { %v938_v11 = vadd.f32 %v934_v7, %v870_v8 }
 0x8b6   :  { %v937_v0 = vadd.f32 %v927_v9, %v869_v10 }
 0x8b7   :  { %v940_v12 = vmax.f32 %v938_v11, 0.0 }
 0x8b8   :  { %v939_v13 = vmax.f32 %v937_v0, 0.0 }
 0x8b9   :  { %v953_v14 = vrot.slane %v940_v12, 6 }
 0x8ba   :  { %v952_v15 = vrot.slane %v939_v13, 7 }
 0x8bc   :  { %v955_v16 = vsel %vm954_vm8, %v953_v14, %v952_v15 }
 0x8bd   :  { %1169 = vmatmul.mubr.msk.f32.vlgmr.msra.gmra.mrb[16].mxu0 %vm122_vm0, %v955_v16 }
 0x990   :  { %v1024_v18 = vpop.f32.mrb[16].mxu0 }
 0x991   :  { %v1025_v19 = vadd.f32 %v1083_v17, %v1024_v18  ;;  %v1170_v20 = vpop.f32.mrb[17].mxu0 }
 0x993   :  { %v1085_v21 = vmul.f32 -1.442695, %v1025_v19 }
 0x995   :  { %1255 = vpow2.f32 %v1085_v21 }
 0x99f   :  { %v1256_v22 = vpop.eup %1255 }
 0x9a0   :  { %v1031_v23 = vadd.f32 1.0, %v1256_v22 }
 0x9a2   :  { %1257 = vrcp.f32 %v1031_v23 }
 0x9ac   :  { %v1258_v24 = vpop.eup %1257 }
 0x9ad   :  { %1035 = vst.msk [vmem:[#allocation12] sm:$0x3] %vm1034_vm9, %v1258_v24 }
 0x9ae   :  { %1380 = shalt.err (!%p1377_p2)
}
 0x9af   :  { %s1381_s23 = scalar_lea.hbm %s1789_s19, 32 }
 0x9b0   :  { %p1382_p3 = scmp.ne.s32.totalorder %s1789_s19, %s1381_s23  ;;  %p1385_p4 = scmp.lt.u32.totalorder %s1381_s23, %s1789_s19 }
 0x9b2   :  { %p1387_p5 = pnand %p1385_p4, %p1382_p3 }
 0x9b4   :  { %1390 = shalt.err (!%p1387_p5)
}
 0x9b5   :  { %1045 = dma.vmem_to_hbm [thread:$0]  %s1043_s4, 32, %s1789_s19, [#allocation5]  }
 0x9b6   :  { %1397 = dma.done.wait [#allocation5], 32  }
 0x9b7   :  { %1398 = vsyncadd [#allocation5], 4294967264 }
 0x9b8   :  { %1049 = vsyncpa [#allocation4], 1 }
 0x9b9   :  { %1050 = vsyncpa [#allocation7], 1 }
 0x9ba   :  { %1051 = vsyncpa [#allocation10], 1 }
 0x9bb   :  { %1052 = vsyncpa [#allocation5], 1 }

</bundles_post_ra>
